<compile_context>
chip_gen: v6e
topology: v6e:2x2x1
jax: 0.10.0
libtpu: 0.0.40
codegen_flags: <defaults>
</compile_context>

<pallas_src>
import functools

import jax
import jax.numpy as jnp
from jax import lax
from jax.experimental import pallas as pl
from jax.experimental.pallas import tpu as pltpu

_EPS = 1e-8  # torch cosine_similarity eps


def _round_up(x, m):
    return ((x + m - 1) // m) * m


def _choose_tile(n_pad, d_pad, out_itemsize, in_itemsize, budget=40 << 20):
    """Output tile edge (multiple of 128) for the main kernel.

    Single grid step when the whole (n_pad, n_pad) output fits the VMEM
    budget; otherwise the largest 128-multiple divisor of n_pad <= 1024 that
    fits (output double-buffer + two double-buffered input blocks).
    """
    def fits(t):
        need = 2 * t * t * out_itemsize + 2 * 2 * t * d_pad * in_itemsize
        return need <= budget

    if n_pad <= 1536 and fits(n_pad):
        return n_pad
    best = 128
    for t in range(128, 1025, 128):
        if n_pad % t == 0 and fits(t):
            best = t
    return best


# ---------------------------------------------------------------------------
# Prologue kernels: (optional dropout) + L2 row-normalization, written once.
# ---------------------------------------------------------------------------
def _normalize_kernel(z_ref, zhat_ref):
    z = z_ref[...].astype(jnp.float32)
    sumsq = jnp.sum(z * z, axis=-1, keepdims=True)
    # z / max(||z||, eps)  ==  z * min(rsqrt(sumsq), 1/eps)   (EUP rsqrt + VPU mul)
    inv = jnp.minimum(lax.rsqrt(sumsq), 1.0 / _EPS)
    zhat_ref[...] = (z * inv).astype(zhat_ref.dtype)


def _dropout_normalize_kernel(z_ref, keep_ref, zhat_ref):
    # NOTE: F.dropout's 1/(1-p) rescale is a uniform per-row scale that cancels
    # under the L2 normalization below (except exactly at the eps clamp for an
    # all-dropped row, where both variants still give a zero vector) -> omitted.
    z = z_ref[...].astype(jnp.float32) * keep_ref[...].astype(jnp.float32)
    sumsq = jnp.sum(z * z, axis=-1, keepdims=True)
    inv = jnp.minimum(lax.rsqrt(sumsq), 1.0 / _EPS)
    zhat_ref[...] = (z * inv).astype(zhat_ref.dtype)


# ---------------------------------------------------------------------------
# Main kernel: one (tile, tile) slab of (cosine(z_i, z_j) + 1) / 2 per step.
# zl is (tile, d_pad); zrt is the pre-transposed (d_pad, tile) block, so the
# dot is in canonical (M,K)x(K,N) form — no per-tile transpose work.
# ---------------------------------------------------------------------------
def _cosine_adj_kernel(zl_ref, zrt_ref, adj_ref):
    sim = lax.dot_general(
        zl_ref[...], zrt_ref[...],
        dimension_numbers=(((1,), (0,)), ((), ())),
        preferred_element_type=jnp.float32)
    adj_ref[...] = ((sim + 1.0) * 0.5).astype(adj_ref.dtype)


def inner_product_decoder(z, dropout, *, training=False, rng_key=None,
                          use_bf16_matmul=False, out_dtype=None):
    """Pallas equivalent of InnerProductDecoder(dropout).forward(z)."""
    n, d = z.shape
    out_dtype = z.dtype if out_dtype is None else jnp.dtype(out_dtype)

    # bf16 MXU operands (f32 accumulate) give ~2-3x matmul throughput (esp. on
    # v5e) but drift ~1e-3 -> gated behind a flag, default off.
    zhat_dtype = jnp.bfloat16 if use_bf16_matmul else jnp.float32

    # Pad N only to a lane-dense multiple of 128 (not to the tile) and pad the
    # feature dim with zero columns to a multiple of 128 (changes nothing).
    n_pad = _round_up(max(n, 1), 128)
    d_pad = _round_up(max(d, 1), 128)

    out_itemsize = jnp.dtype(out_dtype).itemsize
    zh_itemsize = jnp.dtype(zhat_dtype).itemsize
    tile = _choose_tile(n_pad, d_pad, out_itemsize, zh_itemsize)
    grid_rows = n_pad // tile

    apply_dropout = bool(training) and float(dropout) > 0.0
    if apply_dropout and rng_key is None:
        rng_key = jax.random.PRNGKey(0)

    z_p = z
    if n_pad != n or d_pad != d:
        z_p = jnp.pad(z, ((0, n_pad - n), (0, d_pad - d)))

    # --- pass 1: dropout + row normalization (written once per row) ---------
    row_spec = pl.BlockSpec((tile, d_pad), lambda i: (i, 0))
    prologue_vmem = 3 * 2 * tile * d_pad * 4 + 2 * tile * d_pad  # f32 in/out + i8 mask
    prologue_params = pltpu.CompilerParams(
        dimension_semantics=("parallel",),
        vmem_limit_bytes=int(min(max(prologue_vmem + (4 << 20), 32 << 20), 64 << 20)))

    if apply_dropout:
        # Mask drawn once in the wrapper -> identical per-row mask no matter
        # which (i, j) tile later consumes the row (keeps adj symmetric).
        # RNG stream differs from PyTorch's, as with any JAX port.
        keep = jax.random.bernoulli(rng_key, 1.0 - float(dropout), (n, d))
        keep = keep.astype(jnp.int8)
        if n_pad != n or d_pad != d:
            keep = jnp.pad(keep, ((0, n_pad - n), (0, d_pad - d)))
        z_hat = pl.pallas_call(
            _dropout_normalize_kernel,
            out_shape=jax.ShapeDtypeStruct((n_pad, d_pad), zhat_dtype),
            grid=(grid_rows,),
            in_specs=[row_spec, row_spec],
            out_specs=row_spec,
            compiler_params=prologue_params,
        )(z_p, keep)
    else:
        z_hat = pl.pallas_call(
            _normalize_kernel,
            out_shape=jax.ShapeDtypeStruct((n_pad, d_pad), zhat_dtype),
            grid=(grid_rows,),
            in_specs=[row_spec],
            out_specs=row_spec,
            compiler_params=prologue_params,
        )(z_p)

    # One-time transposed copy (tiny: n_pad x d_pad) so the main kernel's
    # RHS blocks are already (K, N) — no repeated in-kernel transpose.
    z_hat_t = z_hat.T

    # --- pass 2: 2-D output-tiled (z_hat @ z_hat^T + 1) / 2 -----------------
    vmem_needed = (2 * tile * tile * out_itemsize          # output double buffer
                   + 2 * 2 * tile * d_pad * zh_itemsize)   # two inputs, double buffered
    vmem_limit = int(min(max(vmem_needed + (4 << 20), 32 << 20), 64 << 20))

    cost = pl.CostEstimate(
        flops=2 * n_pad * n_pad * d_pad + 2 * n_pad * n_pad,
        transcendentals=0,
        bytes_accessed=2 * grid_rows * n_pad * d_pad * zh_itemsize
                       + n_pad * n_pad * out_itemsize,
    )

    adj_p = pl.pallas_call(
        _cosine_adj_kernel,
        out_shape=jax.ShapeDtypeStruct((n_pad, n_pad), out_dtype),
        grid=(grid_rows, grid_rows),
        in_specs=[pl.BlockSpec((tile, d_pad), lambda i, j: (i, 0)),
                  pl.BlockSpec((d_pad, tile), lambda i, j: (0, j))],
        out_specs=pl.BlockSpec((tile, tile), lambda i, j: (i, j)),
        compiler_params=pltpu.CompilerParams(
            dimension_semantics=("parallel", "parallel"),
            vmem_limit_bytes=vmem_limit),
        cost_estimate=cost,
    )(z_hat, z_hat_t)

    if n_pad != n:
        adj_p = adj_p[:n, :n]
    return adj_p


def _reference(z):
    zf = z.astype(jnp.float32)
    norm = jnp.maximum(jnp.sqrt(jnp.sum(zf * zf, axis=-1, keepdims=True)), _EPS)
    zn = zf / norm
    return ((zn @ zn.T + 1.0) * 0.5).astype(z.dtype)


if __name__ == "__main__":
    key = jax.random.PRNGKey(0)

    # Small shape matching the module's intended use (N nodes, latent dim D).
    N, D = 8, 32
    z = jax.random.normal(key, (N, D), dtype=jnp.float32)

    # Eval-mode forward (dropout is a no-op, matching model.eval()).
    adj = inner_product_decoder(z, dropout=0.5, training=False)
    jax.block_until_ready(adj)
    assert adj.shape == (N, N)
    assert jnp.allclose(adj, _reference(z), atol=1e-5, rtol=1e-5), "eval mismatch"

    # Slightly larger shape exercising padding (N not a multiple of 128).
    N2, D2 = 160, 48
    z2 = jax.random.normal(jax.random.PRNGKey(1), (N2, D2), dtype=jnp.float32)
    adj2 = inner_product_decoder(z2, dropout=0.5, training=False)
    jax.block_until_ready(adj2)
    assert adj2.shape == (N2, N2)
    assert jnp.allclose(adj2, _reference(z2), atol=1e-5, rtol=1e-5), "tiled mismatch"

    # Training-mode path (stochastic dropout; mask drawn in the wrapper so the
    # per-row mask is tile-consistent). Sanity-check shape / finiteness / range.
    adj_train = inner_product_decoder(z, dropout=0.5, training=True,
                                      rng_key=jax.random.PRNGKey(123))
    jax.block_until_ready(adj_train)
    assert adj_train.shape == (N, N)
    assert bool(jnp.all(jnp.isfinite(adj_train)))
    assert bool(jnp.all((adj_train >= -1e-5) & (adj_train <= 1.0 + 1e-5)))

    print("KERNEL_OK")
</pallas_src>

<mosaic_0001>
module attributes {stable_mosaic.version = 11 : i64} {
  func.func @_normalize_kernel(%arg0: i32, %arg1: memref<128x128xf32, #tpu.memory_space<vmem>>, %arg2: memref<128x128xf32, #tpu.memory_space<vmem>>) attributes {dimension_semantics = [#tpu.dimension_semantics<parallel>], iteration_bounds = array<i64: 1>, scalar_prefetch = 0 : i64, scratch_operands = 0 : i64, tpu.core_type = #tpu.core_type<tc>, window_params = [{transform_indices = @transform_0, window_bounds = array<i64: 128, 128>}, {transform_indices = @transform_1, window_bounds = array<i64: 128, 128>}]} {
    %c0 = arith.constant 0 : index
    %c0_0 = arith.constant 0 : index
    %0 = vector.load %arg1[%c0, %c0_0] : memref<128x128xf32, #tpu.memory_space<vmem>>, vector<128x128xf32>
    %1 = arith.mulf %0, %0 : vector<128x128xf32>
    %cst = arith.constant dense<0.000000e+00> : vector<128xf32>
    %2 = vector.multi_reduction <add>, %1, %cst [1] : vector<128x128xf32> to vector<128xf32>
    %3 = vector.shape_cast %2 : vector<128xf32> to vector<128x1xf32>
    %4 = math.rsqrt %3 : vector<128x1xf32>
    %cst_1 = arith.constant 1.000000e+08 : f32
    %5 = vector.broadcast %cst_1 : f32 to vector<128x1xf32>
    %6 = arith.minimumf %4, %5 : vector<128x1xf32>
    %7 = vector.broadcast %6 : vector<128x1xf32> to vector<128x128xf32>
    %8 = arith.mulf %0, %7 : vector<128x128xf32>
    %c0_2 = arith.constant 0 : index
    %c0_3 = arith.constant 0 : index
    %9 = vector.load %arg2[%c0_2, %c0_3] : memref<128x128xf32, #tpu.memory_space<vmem>>, vector<128x128xf32>
    tpu.vector_store %arg2[%c0_2, %c0_3], %8 {strides = array<i32>} : memref<128x128xf32, #tpu.memory_space<vmem>>, vector<128x128xf32>,
    return
  }
  func.func @transform_0(%arg0: i32) -> (i32, i32) {
    %c0_i32 = arith.constant 0 : i32
    %c0_i32_0 = arith.constant 0 : i32
    return %arg0, %c0_i32 : i32, i32
  }
  func.func @transform_1(%arg0: i32) -> (i32, i32) {
    %c0_i32 = arith.constant 0 : i32
    %c0_i32_0 = arith.constant 0 : i32
    return %arg0, %c0_i32 : i32, i32
  }
}

</mosaic_0001>

<bundles_post_ra>
// kernel: tpu_custom_call.1
= control target key start
LH: loop header
LB: loop body
LE: loop exit
PB: predicated region body
PF: predicated region fallthrough
CT: control target
= control target key end

     0   :  { %6 = vsyncpa [#allocation3], 0  ;;  %s354_s0 = inlined_call_operand.hbm [shape: f32[128,128], index: 0, kind: input, shape index: {}]   ;;  %s355_s1 = inlined_call_operand.hbm [shape: f32[128,128], index: 1, kind: output, shape index: {}]  }
   0x1   :  { %7 = vsyncpa [#allocation4], 0  ;;  %s248_s6 = smov [#allocation2]  }
   0x2   :  { %s13_s7 = sshll.u32 %s248_s6, 4  ;;  %s14_s7 = int_to_ptr.vmem [resolvable:$true] %s13_s7 }
   0x3   :  { %s212_s8 = scalar_lea.vmem %s14_s7, 2048  ;;  %p217_p1 = scmp.lt.s32.totalorder %s14_s7, %s14_s7 }
   0x4   :  { %p213_p0 = scmp.ne.s32.totalorder %s14_s7, %s212_s8  ;;  %p218_p2 = scmp.lt.s32.totalorder %s212_s8, %s212_s8 }
   0x6   :  { %p219_p3 = por %p218_p2, %p217_p1 }
   0x8   :  { %p220_p4 = pnand %p219_p3, %p213_p0 }
   0xa   :  { %223 = shalt.err (!%p220_p4)
}
   0xb   :  { %s249_s9 = smov 128   ;;  %s250_s10 = smov 8  }
   0xc   :  { %19 = dma.hbm_to_vmem [thread:$0]  %s354_s0, 2048, %s14_s7, [#allocation3], %s249_s9, %s249_s9, %s250_s10  }
   0xd   :  { %244 = dma.done.wait [#allocation3], 2048  }
   0xe   :  { %245 = vsyncadd [#allocation3], 4294965248  ;;  %v268_v0 = vld [vmem:[#allocation2 + $0x10] sm:$0xff]  ;;  %v270_v1 = vld [vmem:[#allocation2] sm:$0xff]  ;;  %s251_s0 = smov [#allocation5]  }
   0xf   :  { %v272_v2 = vld [vmem:[#allocation2 + $0x18] sm:$0xff]  ;;  %v41_v3 = vmul.f32 %v268_v0, %v268_v0  ;;  %v39_v4 = vmul.f32 %v270_v1, %v270_v1  ;;  %v278_v5 = vld [vmem:[#allocation2 + $0x8] sm:$0xff]  ;;  %v286_v9 = vld [vmem:[#allocation2 + $0x20] sm:$0xff]  ;;  %s156_s13 = sshll.u32 %s251_s0, 4  ;;  %s157_s13 = int_to_ptr.vmem [resolvable:$true] %s156_s13 }
  0x10   :  { %v42_v6 = vmul.f32 %v272_v2, %v272_v2  ;;  %v40_v7 = vmul.f32 %v278_v5, %v278_v5  ;;  %v284_v8 = vld [vmem:[#allocation2 + $0x28] sm:$0xff]  ;;  %v43_v11 = vmul.f32 %v286_v9, %v286_v9  ;;  %v292_v12 = vld [vmem:[#allocation2 + $0x38] sm:$0xff]  ;;  %v294_v13 = vld [vmem:[#allocation2 + $0x30] sm:$0xff]  ;;  %s224_s14 = scalar_lea.vmem %s157_s13, 2048  ;;  %p229_p6 = scmp.lt.s32.totalorder %s157_s13, %s157_s13 }
  0x11   :  { %59 = vadd.xlane.f32.xlu1 %v41_v3  ;;  %55 = vadd.xlane.f32.xlu0 %v39_v4  ;;  %v44_v10 = vmul.f32 %v284_v8, %v284_v8  ;;  %v46_v14 = vmul.f32 %v292_v12, %v292_v12  ;;  %v45_v15 = vmul.f32 %v294_v13, %v294_v13  ;;  %v300_v16 = vld [vmem:[#allocation2 + $0x48] sm:$0xff]  ;;  %v302_v17 = vld [vmem:[#allocation2 + $0x40] sm:$0xff]  ;;  %v308_v20 = vld [vmem:[#allocation2 + $0x58] sm:$0xff]  ;;  %p225_p5 = scmp.ne.s32.totalorder %s157_s13, %s224_s14  ;;  %p230_p7 = scmp.lt.s32.totalorder %s224_s14, %s224_s14 }
  0x12   :  { %v48_v18 = vmul.f32 %v300_v16, %v300_v16  ;;  %v47_v19 = vmul.f32 %v302_v17, %v302_v17  ;;  %v310_v21 = vld [vmem:[#allocation2 + $0x50] sm:$0xff]  ;;  %v50_v22 = vmul.f32 %v308_v20, %v308_v20  ;;  %v316_v24 = vld [vmem:[#allocation2 + $0x68] sm:$0xff]  ;;  %v318_v25 = vld [vmem:[#allocation2 + $0x60] sm:$0xff] }
  0x13   :  { %v49_v23 = vmul.f32 %v310_v21, %v310_v21  ;;  %v52_v26 = vmul.f32 %v316_v24, %v316_v24  ;;  %v51_v27 = vmul.f32 %v318_v25, %v318_v25  ;;  %v324_v28 = vld [vmem:[#allocation2 + $0x78] sm:$0xff]  ;;  %v326_v29 = vld [vmem:[#allocation2 + $0x70] sm:$0xff]  ;;  %p231_p8 = por %p230_p7, %p229_p6 }
  0x14   :  { %v54_v30 = vmul.f32 %v324_v28, %v324_v28  ;;  %v53_v31 = vmul.f32 %v326_v29, %v326_v29 }
  0x15   :  { %61 = vadd.xlane.f32.xlu1 %v42_v6  ;;  %57 = vadd.xlane.f32.xlu0 %v40_v7  ;;  %p232_p9 = pnand %p231_p8, %p225_p5 }
  0x19   :  { %65 = vadd.xlane.f32.xlu1 %v44_v10  ;;  %63 = vadd.xlane.f32.xlu0 %v43_v11 }
  0x1d   :  { %69 = vadd.xlane.f32.xlu1 %v46_v14  ;;  %67 = vadd.xlane.f32.xlu0 %v45_v15 }
  0x21   :  { %73 = vadd.xlane.f32.xlu1 %v48_v18  ;;  %71 = vadd.xlane.f32.xlu0 %v47_v19 }
  0x25   :  { %77 = vadd.xlane.f32.xlu1 %v50_v22  ;;  %75 = vadd.xlane.f32.xlu0 %v49_v23 }
  0x29   :  { %81 = vadd.xlane.f32.xlu1 %v52_v26  ;;  %79 = vadd.xlane.f32.xlu0 %v51_v27 }
  0x2d   :  { %85 = vadd.xlane.f32.xlu1 %v54_v30  ;;  %83 = vadd.xlane.f32.xlu0 %v53_v31 }
  0x9a   :  { %v60_v32 = vpop.xlane.xlu1 %59  ;;  %v56_v33 = vpop.xlane.xlu0 %55 }
  0x9b   :  { %172 = vrsqrt.f32 %v60_v32 }
  0x9c   :  { %174 = vrsqrt.f32 %v56_v33 }
  0x9e   :  { %v62_v34 = vpop.xlane.xlu1 %61  ;;  %v58_v35 = vpop.xlane.xlu0 %57 }
  0x9f   :  { %176 = vrsqrt.f32 %v62_v34 }
  0xa0   :  { %178 = vrsqrt.f32 %v58_v35 }
  0xa2   :  { %v66_v36 = vpop.xlane.xlu1 %65  ;;  %v64_v37 = vpop.xlane.xlu0 %63 }
  0xa3   :  { %180 = vrsqrt.f32 %v66_v36 }
  0xa4   :  { %182 = vrsqrt.f32 %v64_v37 }
  0xa6   :  { %v70_v38 = vpop.xlane.xlu1 %69  ;;  %v68_v39 = vpop.xlane.xlu0 %67 }
  0xa7   :  { %184 = vrsqrt.f32 %v70_v38 }
  0xa8   :  { %v173_v40 = vpop.eup %172  ;;  %186 = vrsqrt.f32 %v68_v39 }
  0xa9   :  { %v175_v41 = vpop.eup %174  ;;  %v105_v42 = vmin.f32 %v173_v40, 1e+08 }
  0xaa   :  { %v103_v43 = vmin.f32 %v175_v41, 1e+08  ;;  %v74_v44 = vpop.xlane.xlu1 %73  ;;  %v72_v45 = vpop.xlane.xlu0 %71 }
  0xab   :  { %v121_v46 = vmul.f32 %v105_v42, %v268_v0  ;;  %188 = vrsqrt.f32 %v74_v44 }
  0xac   :  { %v177_v47 = vpop.eup %176  ;;  %v119_v48 = vmul.f32 %v103_v43, %v270_v1  ;;  %190 = vrsqrt.f32 %v72_v45 }
  0xad   :  { %v179_v49 = vpop.eup %178  ;;  %137 = vst [vmem:[#allocation5 + $0x10] sm:$0xff] %v121_v46  ;;  %v106_v50 = vmin.f32 %v177_v47, 1e+08 }
  0xae   :  { %135 = vst [vmem:[#allocation5] sm:$0xff] %v119_v48  ;;  %v104_v51 = vmin.f32 %v179_v49, 1e+08  ;;  %v78_v52 = vpop.xlane.xlu1 %77  ;;  %v76_v53 = vpop.xlane.xlu0 %75 }
  0xaf   :  { %v122_v54 = vmul.f32 %v106_v50, %v272_v2  ;;  %192 = vrsqrt.f32 %v78_v52 }
  0xb0   :  { %v181_v55 = vpop.eup %180  ;;  %v120_v56 = vmul.f32 %v104_v51, %v278_v5  ;;  %194 = vrsqrt.f32 %v76_v53 }
  0xb1   :  { %v183_v57 = vpop.eup %182  ;;  %138 = vst [vmem:[#allocation5 + $0x18] sm:$0xff] %v122_v54  ;;  %v108_v58 = vmin.f32 %v181_v55, 1e+08 }
  0xb2   :  { %136 = vst [vmem:[#allocation5 + $0x8] sm:$0xff] %v120_v56  ;;  %v107_v59 = vmin.f32 %v183_v57, 1e+08  ;;  %v82_v60 = vpop.xlane.xlu1 %81  ;;  %v80_v61 = vpop.xlane.xlu0 %79 }
  0xb3   :  { %v124_v62 = vmul.f32 %v108_v58, %v284_v8  ;;  %196 = vrsqrt.f32 %v82_v60 }
  0xb4   :  { %v185_v63 = vpop.eup %184  ;;  %v123_v0 = vmul.f32 %v107_v59, %v286_v9  ;;  %198 = vrsqrt.f32 %v80_v61 }
  0xb5   :  { %v187_v1 = vpop.eup %186  ;;  %140 = vst [vmem:[#allocation5 + $0x28] sm:$0xff] %v124_v62  ;;  %v110_v2 = vmin.f32 %v185_v63, 1e+08 }
  0xb6   :  { %139 = vst [vmem:[#allocation5 + $0x20] sm:$0xff] %v123_v0  ;;  %v109_v3 = vmin.f32 %v187_v1, 1e+08  ;;  %v86_v4 = vpop.xlane.xlu1 %85  ;;  %v84_v5 = vpop.xlane.xlu0 %83 }
  0xb7   :  { %v126_v6 = vmul.f32 %v110_v2, %v292_v12  ;;  %200 = vrsqrt.f32 %v86_v4 }
  0xb8   :  { %v189_v7 = vpop.eup %188  ;;  %v125_v10 = vmul.f32 %v109_v3, %v294_v13  ;;  %202 = vrsqrt.f32 %v84_v5 }
  0xb9   :  { %v191_v8 = vpop.eup %190  ;;  %142 = vst [vmem:[#allocation5 + $0x38] sm:$0xff] %v126_v6  ;;  %v112_v11 = vmin.f32 %v189_v7, 1e+08 }
  0xba   :  { %141 = vst [vmem:[#allocation5 + $0x30] sm:$0xff] %v125_v10  ;;  %v111_v9 = vmin.f32 %v191_v8, 1e+08 }
  0xbb   :  { %v128_v14 = vmul.f32 %v112_v11, %v300_v16 }
  0xbc   :  { %v193_v15 = vpop.eup %192  ;;  %v127_v18 = vmul.f32 %v111_v9, %v302_v17 }
  0xbd   :  { %v195_v19 = vpop.eup %194  ;;  %144 = vst [vmem:[#allocation5 + $0x48] sm:$0xff] %v128_v14  ;;  %v114_v22 = vmin.f32 %v193_v15, 1e+08 }
  0xbe   :  { %143 = vst [vmem:[#allocation5 + $0x40] sm:$0xff] %v127_v18  ;;  %v113_v12 = vmin.f32 %v195_v19, 1e+08 }
  0xbf   :  { %v130_v23 = vmul.f32 %v114_v22, %v308_v20 }
  0xc0   :  { %v197_v26 = vpop.eup %196  ;;  %v129_v13 = vmul.f32 %v113_v12, %v310_v21 }
  0xc1   :  { %v199_v27 = vpop.eup %198  ;;  %146 = vst [vmem:[#allocation5 + $0x58] sm:$0xff] %v130_v23  ;;  %v116_v30 = vmin.f32 %v197_v26, 1e+08 }
  0xc2   :  { %145 = vst [vmem:[#allocation5 + $0x50] sm:$0xff] %v129_v13  ;;  %v115_v31 = vmin.f32 %v199_v27, 1e+08 }
  0xc3   :  { %v132_v16 = vmul.f32 %v116_v30, %v316_v24 }
  0xc4   :  { %v201_v32 = vpop.eup %200  ;;  %v131_v17 = vmul.f32 %v115_v31, %v318_v25 }
  0xc5   :  { %v203_v33 = vpop.eup %202  ;;  %148 = vst [vmem:[#allocation5 + $0x68] sm:$0xff] %v132_v16  ;;  %v118_v34 = vmin.f32 %v201_v32, 1e+08 }
  0xc6   :  { %147 = vst [vmem:[#allocation5 + $0x60] sm:$0xff] %v131_v17  ;;  %v117_v20 = vmin.f32 %v203_v33, 1e+08 }
  0xc7   :  { %v134_v35 = vmul.f32 %v118_v34, %v324_v28 }
  0xc8   :  { %v133_v21 = vmul.f32 %v117_v20, %v326_v29 }
  0xc9   :  { %150 = vst [vmem:[#allocation5 + $0x78] sm:$0xff] %v134_v35 }
  0xca   :  { %149 = vst [vmem:[#allocation5 + $0x70] sm:$0xff] %v133_v21 }
  0xcb   :  { %235 = shalt.err (!%p232_p9)
}
  0xcc   :  { %162 = dma.vmem_to_hbm [thread:$0]  %s157_s13, 2048, %s355_s1, [#allocation4], %s249_s9, %s249_s9, %s250_s10  }
  0xcd   :  { %246 = dma.done.wait [#allocation4], 2048  }
  0xce   :  { %247 = vsyncadd [#allocation4], 4294965248 }
  0xcf   :  { %166 = vsyncpa [#allocation3], 1 }
  0xd0   :  { %167 = vsyncpa [#allocation4], 1 }

</bundles_post_ra>
